<compile_context>
chip_gen: v6e
topology: v6e:2x2x1
jax: 0.10.0
libtpu: 0.0.40
codegen_flags: <defaults>
</compile_context>

<pallas_src>
import functools

import jax
import jax.numpy as jnp
from jax.experimental import pallas as pl
from jax.experimental.pallas import tpu as pltpu

in_channels = 1
num_classes = 4


# ---------------------------------------------------------------------------
# Hardware query helpers
# ---------------------------------------------------------------------------
def _vmem_capacity_bytes():
    """Per-core VMEM capacity (64 MiB on v7x, 128 MiB on v5e/v6e)."""
    try:
        return int(pltpu.get_tpu_info().vmem_capacity_bytes)
    except Exception:
        return 64 * 1024 * 1024        # conservative fallback (v7x-sized)


# ---------------------------------------------------------------------------
# Pallas kernels
# ---------------------------------------------------------------------------
def _gemm_bias_act_kernel(relu_mode, relu_cols, co_tile, has_res,
                          x_ref, w_ref, b_ref, *rest):
    """Fused GEMM + bias (+ residual) (+ full or per-column-prefix ReLU).

    Blocks:
      x_ref : (tm, K)   bf16      w_ref : (K, co_tile) bf16
      b_ref : (1, co_tile) f32    res_ref (optional): (tm, co_tile) f32
      o_ref : (tm, co_tile) f32
    """
    if has_res:
        res_ref, o_ref = rest
    else:
        (o_ref,) = rest

    acc = jnp.dot(x_ref[...], w_ref[...], preferred_element_type=jnp.float32)
    acc = acc + b_ref[...]
    if has_res:
        acc = acc + res_ref[...]

    if relu_mode == "all":
        acc = jnp.maximum(acc, 0.0)
    elif relu_mode == "prefix":
        # ReLU only the first `relu_cols` global output columns (conv1 half of
        # the fused conv1+identity GEMM); identity columns pass through.
        col0 = pl.program_id(0) * co_tile
        cols = col0 + jax.lax.broadcasted_iota(jnp.int32, (1, co_tile), 1)
        acc = jnp.where(cols < relu_cols, jnp.maximum(acc, 0.0), acc)

    o_ref[...] = acc.astype(o_ref.dtype)


def _maxpool2x2_kernel(x_ref, o_ref):
    """2x2/stride-2 max pool on an NHWC row-tile, no transposes.

    W pairs via strided even/odd loads (sublane stride 2), H pairs via a
    leading-dim reshape + leading-axis max.
    """
    n, th, w, c = x_ref.shape
    h2 = th // 2
    w2 = w // 2
    xe = x_ref[:, :, pl.ds(0, w2, stride=2), :]      # (n, th, w2, c)
    xo = x_ref[:, :, pl.ds(1, w2, stride=2), :]
    m = jnp.maximum(xe, xo)                          # pooled along W
    m = m.reshape(n, h2, 2, w2, c)                   # leading-dim split only
    o_ref[...] = jnp.max(m, axis=2)                  # pooled along H


# ---------------------------------------------------------------------------
# Fused GEMM wrapper (tiled over rows and output columns)
# ---------------------------------------------------------------------------
def _fused_gemm(x2d, w2d, b, *, residual=None, relu_all=False, relu_prefix=None):
    """y = act(x2d @ w2d + b [+ residual]).

    x2d: (M, K), w2d: (K, Cout), b: (Cout,), residual: optional (M, Cout).
    Returns (M, Cout) float32.
    """
    M, K = x2d.shape
    K2, Cout = w2d.shape
    assert K == K2

    # ---- pad a tiny K (first conv: Cin=1 -> K=9) to a dense 128 lanes -------
    if K < 128:
        kp = 128 - K
        x2d = jnp.pad(x2d, ((0, 0), (0, kp)))
        w2d = jnp.pad(w2d, ((0, kp), (0, 0)))
        K = 128

    # ---- pad Cout to a lane-dense multiple of 128 (unmasked stores) ---------
    Cout_p = ((Cout + 127) // 128) * 128
    if Cout_p != Cout:
        w2d = jnp.pad(w2d, ((0, 0), (0, Cout_p - Cout)))
        b = jnp.pad(b, (0, Cout_p - Cout))
        if residual is not None:
            residual = jnp.pad(residual, ((0, 0), (0, Cout_p - Cout)))

    # 256-wide output tiles fill the v6e/v7x 256x256 MXU; fall back to 128.
    co_tile = 256 if Cout_p % 256 == 0 else 128
    n_co = Cout_p // co_tile

    # ---- bf16 MXU inputs, f32 accumulator / bias / residual -----------------
    x2d = x2d.astype(jnp.bfloat16)
    w2d = w2d.astype(jnp.bfloat16)
    b2 = b.reshape(1, Cout_p).astype(jnp.float32)
    if residual is not None:
        residual = residual.astype(jnp.float32)

    # ---- pick the M tile from the per-generation VMEM budget ----------------
    cap = _vmem_capacity_bytes()
    budget = int(cap * 0.70)                          # leave headroom (v7x!)
    fixed = 2 * K * co_tile * 2                       # weight, double-buffered
    per_row = 2 * K * 2 + 2 * co_tile * 4             # x (bf16) + out (f32)
    if residual is not None:
        per_row += 2 * co_tile * 4
    tm = max(8, (budget - fixed) // per_row)
    tm = min(2048, tm)
    tm = (tm // 256) * 256 if tm >= 256 else (tm // 8) * 8
    tm = max(8, tm)

    if tm >= M:
        tm = M
        Mp = M
    else:
        Mp = ((M + tm - 1) // tm) * tm
        if Mp != M:
            x2d = jnp.pad(x2d, ((0, Mp - M), (0, 0)))
            if residual is not None:
                residual = jnp.pad(residual, ((0, Mp - M), (0, 0)))
    n_m = Mp // tm

    # ---- specs: grid (co, m); weight block invariant in m => stays resident -
    in_specs = [
        pl.BlockSpec((tm, K), lambda j, m: (m, 0)),
        pl.BlockSpec((K, co_tile), lambda j, m: (0, j)),
        pl.BlockSpec((1, co_tile), lambda j, m: (0, j)),
    ]
    args = [x2d, w2d, b2]
    if residual is not None:
        in_specs.append(pl.BlockSpec((tm, co_tile), lambda j, m: (m, j)))
        args.append(residual)
    out_spec = pl.BlockSpec((tm, co_tile), lambda j, m: (m, j))

    if relu_all:
        relu_mode, relu_cols = "all", 0
    elif relu_prefix is not None and relu_prefix > 0:
        relu_mode, relu_cols = "prefix", int(relu_prefix)
    else:
        relu_mode, relu_cols = "none", 0

    kernel = functools.partial(_gemm_bias_act_kernel,
                               relu_mode, relu_cols, co_tile,
                               residual is not None)

    flops = 2 * Mp * K * Cout_p
    bytes_acc = (x2d.size * 2 + w2d.size * 2 + b2.size * 4 + Mp * Cout_p * 4
                 + (residual.size * 4 if residual is not None else 0))
    vmem_needed = fixed + tm * per_row + 2 * co_tile * 4 + (1 << 20)
    vmem_limit = int(min(int(cap * 0.85),
                         max(int(vmem_needed * 1.2), 32 * 1024 * 1024)))

    y = pl.pallas_call(
        kernel,
        out_shape=jax.ShapeDtypeStruct((Mp, Cout_p), jnp.float32),
        grid_spec=pltpu.PrefetchScalarGridSpec(
            num_scalar_prefetch=0,
            grid=(n_co, n_m),
            in_specs=in_specs,
            out_specs=out_spec,
        ),
        compiler_params=pltpu.CompilerParams(
            dimension_semantics=("parallel", "parallel"),
            vmem_limit_bytes=vmem_limit,
        ),
        cost_estimate=pl.CostEstimate(flops=flops, transcendentals=0,
                                      bytes_accessed=bytes_acc),
    )(*args)

    if Mp != M or Cout_p != Cout:
        y = y[:M, :Cout]
    return y


# ---------------------------------------------------------------------------
# Conv / pool wrappers
# ---------------------------------------------------------------------------
def conv2d(x, w, b, *, relu=False, relu_prefix=None, residual=None):
    """nn.Conv2d, stride 1, 'same' padding ((k-1)//2), NHWC/HWIO.

    x: (N, H, W, Cin), w: (kh, kw, Cin, Cout), b: (Cout,),
    residual: optional (N, H, W, Cout) added (f32) before the ReLU,
    relu_prefix: ReLU only the first `relu_prefix` output channels.
    """
    N, H, W, Cin = x.shape
    kh, kw, _, Cout = w.shape
    ph, pw = (kh - 1) // 2, (kw - 1) // 2

    # im2col glue in bf16 (half the HBM bytes of the 9x-expanded matrix).
    # NOTE: forming the taps inside the GEMM kernel from a halo tile would
    # remove this materialization entirely; kept in glue for robustness.
    xb = x.astype(jnp.bfloat16)
    xp = jnp.pad(xb, ((0, 0), (ph, ph), (pw, pw), (0, 0))) if (ph or pw) else xb
    taps = [xp[:, dy:dy + H, dx:dx + W, :] for dy in range(kh) for dx in range(kw)]
    patches = jnp.concatenate(taps, axis=-1) if len(taps) > 1 else taps[0]
    x2d = patches.reshape(N * H * W, kh * kw * Cin)
    w2d = w.reshape(kh * kw * Cin, Cout)           # tap-major, channel-minor
    res2d = None if residual is None else residual.reshape(N * H * W, Cout)

    y2d = _fused_gemm(x2d, w2d, b, residual=res2d,
                      relu_all=relu, relu_prefix=relu_prefix)
    return y2d.reshape(N, H, W, Cout)


def conv_transpose2x2(x, w, b):
    """nn.ConvTranspose2d(Cin, Cout, kernel_size=2, stride=2).

    x: (N, H, W, Cin), w: (Cin, Cout, 2, 2) (PyTorch layout), b: (Cout,).
    Non-overlapping taps -> one GEMM producing 4*Cout columns, then a
    pixel-shuffle reshape (leading-dim transpose only, lanes untouched).
    """
    N, H, W, Cin = x.shape
    Cout = w.shape[1]
    # w2d[ci, (dy*2 + dx)*Cout + co] = w[ci, co, dy, dx]
    w2d = jnp.transpose(w, (0, 2, 3, 1)).reshape(Cin, 4 * Cout)
    b_flat = jnp.tile(b, 4)
    y2d = _fused_gemm(x.reshape(N * H * W, Cin), w2d, b_flat)   # (N*H*W, 4*Cout)
    y = y2d.reshape(N, H, W, 2, 2, Cout)
    y = jnp.transpose(y, (0, 1, 3, 2, 4, 5))                    # leading dims only
    return y.reshape(N, 2 * H, 2 * W, Cout)


def maxpool2x2(x):
    """nn.MaxPool2d(kernel_size=2, stride=2) on NHWC input (even H, W)."""
    N, H, W, C = x.shape
    assert H % 2 == 0 and W % 2 == 0, "power-of-2 spatial sizes expected"

    # Row-tile so one block stays a few MB at realistic resolutions.
    bytes_per_row = N * W * C * x.dtype.itemsize
    th = H
    max_block = 4 * 1024 * 1024
    while th % 4 == 0 and th * bytes_per_row > max_block:
        th //= 2

    return pl.pallas_call(
        _maxpool2x2_kernel,
        out_shape=jax.ShapeDtypeStruct((N, H // 2, W // 2, C), x.dtype),
        grid_spec=pltpu.PrefetchScalarGridSpec(
            num_scalar_prefetch=0,
            grid=(H // th,),
            in_specs=[pl.BlockSpec((N, th, W, C), lambda i: (0, i, 0, 0))],
            out_specs=pl.BlockSpec((N, th // 2, W // 2, C),
                                   lambda i: (0, i, 0, 0)),
        ),
        compiler_params=pltpu.CompilerParams(
            dimension_semantics=("parallel",)),
    )(x)


# ---------------------------------------------------------------------------
# UNet blocks (composition of the kernels above)
# ---------------------------------------------------------------------------
def double_conv(x, p):
    """relu(conv2(relu(conv1(x))) + identity(x)); identity is a 1x1 conv.

    conv1 and the 1x1 identity share one im2col + one GEMM (the 1x1 weight is
    embedded at the 3x3 center tap as extra output columns); ReLU is applied
    only to the conv1 half via the in-kernel prefix mask.
    """
    cin = x.shape[-1]
    cout = p["b1"].shape[0]
    id3 = jnp.zeros((3, 3, cin, cout), p["idw"].dtype).at[1, 1].set(p["idw"][0, 0])
    w_cat = jnp.concatenate([p["w1"], id3], axis=3)          # (3,3,Cin,2*Cout)
    b_cat = jnp.concatenate([p["b1"], p["idb"]])
    y = conv2d(x, w_cat, b_cat, relu_prefix=cout)
    out1, identity = y[..., :cout], y[..., cout:]
    return conv2d(out1, p["w2"], p["b2"], residual=identity, relu=True)


def down_sample(x, p):
    down = double_conv(x, p)
    return down, maxpool2x2(down)


def up_sample(x1, x2, p):
    up = conv_transpose2x2(x1, p["up_w"], p["up_b"])
    cat = jnp.concatenate([up, x2], axis=-1)   # channel concat (== torch.cat dim=1)
    return double_conv(cat, p["conv"])


def unet_forward(params, x):
    # x: (N, H, W, in_channels) NHWC
    d1, p1 = down_sample(x, params["down1"])
    d2, p2 = down_sample(p1, params["down2"])
    d3, p3 = down_sample(p2, params["down3"])
    d4, p4 = down_sample(p3, params["down4"])
    b = double_conv(p4, params["bottleneck"])
    u1 = up_sample(b, d4, params["up1"])
    u2 = up_sample(u1, d3, params["up2"])
    u3 = up_sample(u2, d2, params["up3"])
    u4 = up_sample(u3, d1, params["up4"])
    ow, ob = params["out"]
    return conv2d(u4, ow, ob)                  # (N, H, W, num_classes)


# ---------------------------------------------------------------------------
# Deterministic parameter init (shapes match the PyTorch module's __init__)
# ---------------------------------------------------------------------------
def _conv_params(key, kh, kw, cin, cout):
    k1, k2 = jax.random.split(key)
    fan_in = kh * kw * cin
    w = jax.random.normal(k1, (kh, kw, cin, cout), jnp.float32) / jnp.sqrt(float(fan_in))
    b = jax.random.normal(k2, (cout,), jnp.float32) * 0.01
    return w, b


def init_unet_params(key, in_ch, n_classes):
    keys = iter(jax.random.split(key, 64))

    def dc(cin, cout):
        w1, b1 = _conv_params(next(keys), 3, 3, cin, cout)
        w2, b2 = _conv_params(next(keys), 3, 3, cout, cout)
        iw, ib = _conv_params(next(keys), 1, 1, cin, cout)
        return {"w1": w1, "b1": b1, "w2": w2, "b2": b2, "idw": iw, "idb": ib}

    def up(cin, cout):
        k1, k2 = jax.random.split(next(keys))
        uw = jax.random.normal(k1, (cin, cin // 2, 2, 2), jnp.float32) / jnp.sqrt(float(cin))
        ub = jax.random.normal(k2, (cin // 2,), jnp.float32) * 0.01
        return {"up_w": uw, "up_b": ub, "conv": dc(cin, cout)}

    params = {
        "down1": dc(in_ch, 64),
        "down2": dc(64, 128),
        "down3": dc(128, 256),
        "down4": dc(256, 512),
        "bottleneck": dc(512, 1024),
        "up1": up(1024, 512),
        "up2": up(512, 256),
        "up3": up(256, 128),
        "up4": up(128, 64),
        "out": _conv_params(next(keys), 1, 1, 64, n_classes),
    }
    return params


# ---------------------------------------------------------------------------
if __name__ == "__main__":
    key = jax.random.PRNGKey(0)
    pkey, xkey = jax.random.split(key)

    params = init_unet_params(pkey, in_channels, num_classes)

    # PyTorch-convention input: NCHW, batch=2, channels=1, 16x16 spatial.
    x_nchw = jax.random.normal(xkey, (2, in_channels, 16, 16), jnp.float32)
    x_nhwc = jnp.transpose(x_nchw, (0, 2, 3, 1))

    y_nhwc = unet_forward(params, x_nhwc)
    y_nchw = jnp.transpose(y_nhwc, (0, 3, 1, 2))   # back to NCHW like the nn.Module
    y_nchw = jax.block_until_ready(y_nchw)

    assert y_nchw.shape == (2, num_classes, 16, 16), y_nchw.shape
    assert bool(jnp.all(jnp.isfinite(y_nchw)))
    print("KERNEL_OK")
</pallas_src>

<mosaic_0001>
module attributes {stable_mosaic.version = 11 : i64} {
  func.func @_gemm_bias_act_kernel(%arg0: i32, %arg1: i32, %arg2: memref<512x128xbf16, #tpu.memory_space<vmem>>, %arg3: memref<128x128xbf16, #tpu.memory_space<vmem>>, %arg4: memref<1x128xf32, #tpu.memory_space<vmem>>, %arg5: memref<512x128xf32, #tpu.memory_space<vmem>>) attributes {dimension_semantics = [#tpu.dimension_semantics<parallel>, #tpu.dimension_semantics<parallel>], iteration_bounds = array<i64: 1, 1>, scalar_prefetch = 0 : i64, scratch_operands = 0 : i64, tpu.core_type = #tpu.core_type<tc>, window_params = [{transform_indices = @transform_0, window_bounds = array<i64: 512, 128>}, {transform_indices = @transform_1, window_bounds = array<i64: 128, 128>}, {transform_indices = @transform_2, window_bounds = array<i64: 1, 128>}, {transform_indices = @transform_3, window_bounds = array<i64: 512, 128>}]} {
    %c0 = arith.constant 0 : index
    %c0_0 = arith.constant 0 : index
    %0 = vector.load %arg2[%c0, %c0_0] : memref<512x128xbf16, #tpu.memory_space<vmem>>, vector<512x128xbf16>
    %c0_1 = arith.constant 0 : index
    %c0_2 = arith.constant 0 : index
    %1 = vector.load %arg3[%c0_1, %c0_2] : memref<128x128xbf16, #tpu.memory_space<vmem>>, vector<128x128xbf16>
    %cst = arith.constant dense<0.000000e+00> : vector<512x128xf32>
    %2 = tpu.matmul %0, %1, %cst {dimension_numbers = #tpu.dot_dimension_numbers<[1], [0], [0], [1], [0, 0, 1, 1], [], []>} : vector<512x128xbf16>, vector<128x128xbf16>, vector<512x128xf32> -> vector<512x128xf32>
    %c0_3 = arith.constant 0 : index
    %c0_4 = arith.constant 0 : index
    %3 = vector.load %arg4[%c0_3, %c0_4] : memref<1x128xf32, #tpu.memory_space<vmem>>, vector<1x128xf32>
    %4 = vector.broadcast %3 : vector<1x128xf32> to vector<512x128xf32>
    %5 = arith.addf %2, %4 : vector<512x128xf32>
    %c128_i32 = arith.constant 128 : i32
    %6 = arith.muli %arg0, %c128_i32 : i32
    %7 = tpu.iota {dimensions = array<i32: 1>} : vector<1x128xi32>
    %8 = vector.broadcast %6 : i32 to vector<1x128xi32>
    %9 = arith.addi %8, %7 : vector<1x128xi32>
    %c64_i32 = arith.constant 64 : i32
    %10 = vector.broadcast %c64_i32 : i32 to vector<1x128xi32>
    %11 = arith.cmpi slt, %9, %10 : vector<1x128xi32>
    %cst_5 = arith.constant 0.000000e+00 : f32
    %12 = vector.broadcast %cst_5 : f32 to vector<512x128xf32>
    %13 = arith.maximumf %5, %12 : vector<512x128xf32>
    %14 = vector.shape_cast %11 : vector<1x128xi1> to vector<1x128xi1>
    %15 = vector.broadcast %14 : vector<1x128xi1> to vector<512x128xi1>
    %16 = arith.select %15, %13, %5 : vector<512x128xi1>, vector<512x128xf32>
    %c0_6 = arith.constant 0 : index
    %c0_7 = arith.constant 0 : index
    %17 = vector.load %arg5[%c0_6, %c0_7] : memref<512x128xf32, #tpu.memory_space<vmem>>, vector<512x128xf32>
    tpu.vector_store %arg5[%c0_6, %c0_7], %16 {strides = array<i32>} : memref<512x128xf32, #tpu.memory_space<vmem>>, vector<512x128xf32>,
    return
  }
  func.func @transform_0(%arg0: i32, %arg1: i32) -> (i32, i32) {
    %c0_i32 = arith.constant 0 : i32
    %c0_i32_0 = arith.constant 0 : i32
    return %arg1, %c0_i32 : i32, i32
  }
  func.func @transform_1(%arg0: i32, %arg1: i32) -> (i32, i32) {
    %c0_i32 = arith.constant 0 : i32
    %c0_i32_0 = arith.constant 0 : i32
    return %c0_i32, %arg0 : i32, i32
  }
  func.func @transform_2(%arg0: i32, %arg1: i32) -> (i32, i32) {
    %c0_i32 = arith.constant 0 : i32
    %c0_i32_0 = arith.constant 0 : i32
    return %c0_i32, %arg0 : i32, i32
  }
  func.func @transform_3(%arg0: i32, %arg1: i32) -> (i32, i32) {
    %c0_i32 = arith.constant 0 : i32
    return %arg1, %arg0 : i32, i32
  }
}

</mosaic_0001>

<bundles_post_ra>
// kernel: tpu_custom_call.1
= control target key start
LH: loop header
LB: loop body
LE: loop exit
PB: predicated region body
PF: predicated region fallthrough
CT: control target
= control target key end

     0   :  { %8 = vsyncpa [#allocation3], 0  ;;  %s1404_s0 = inlined_call_operand.hbm [shape: bf16[512,128], index: 0, kind: input, shape index: {}]   ;;  %s1405_s1 = inlined_call_operand.hbm [shape: bf16[128,128], index: 1, kind: input, shape index: {}]   ;;  %s1406_s2 = inlined_call_operand.vmem [shape: f32[1,128], index: 2, kind: input, shape index: {}]   ;;  %s1407_s3 = inlined_call_operand.hbm [shape: f32[512,128], index: 3, kind: output, shape index: {}]  }
   0x1   :  { %9 = vsyncpa [#allocation6], 0 }
   0x2   :  { %10 = vsyncpa [#allocation4], 0  ;;  %s1168_s12 = smov [#allocation2]  }
   0x3   :  { %s16_s13 = sshll.u32 %s1168_s12, 4  ;;  %s17_s13 = int_to_ptr.vmem [resolvable:$true] %s16_s13 }
   0x4   :  { %s1110_s14 = scalar_lea.vmem %s17_s13, 4096  ;;  %p1115_p1 = scmp.lt.s32.totalorder %s17_s13, %s17_s13 }
   0x5   :  { %p1111_p0 = scmp.ne.s32.totalorder %s17_s13, %s1110_s14  ;;  %p1116_p2 = scmp.lt.s32.totalorder %s1110_s14, %s1110_s14 }
   0x7   :  { %p1117_p3 = por %p1116_p2, %p1115_p1 }
   0x9   :  { %p1118_p4 = pnand %p1117_p3, %p1111_p0 }
   0xb   :  { %1121 = shalt.err (!%p1118_p4)
}
   0xc   :  { %s1169_s15 = smov 64   ;;  %s1170_s16 = smov 4  }
   0xd   :  { %22 = dma.hbm_to_vmem [thread:$0]  %s1404_s0, 4096, %s17_s13, [#allocation3], %s1169_s15, %s1169_s15, %s1170_s16  }
   0xe   :  { %s1171_s19 = smov [#allocation5]  }
   0xf   :  { %s28_s20 = sshll.u32 %s1171_s19, 4  ;;  %s29_s20 = int_to_ptr.vmem [resolvable:$true] %s28_s20 }
  0x10   :  { %s1130_s21 = scalar_lea.vmem %s29_s20, 1024  ;;  %p1135_p6 = scmp.lt.s32.totalorder %s29_s20, %s29_s20 }
  0x11   :  { %p1131_p5 = scmp.ne.s32.totalorder %s29_s20, %s1130_s21  ;;  %p1136_p7 = scmp.lt.s32.totalorder %s1130_s21, %s1130_s21 }
  0x13   :  { %p1137_p8 = por %p1136_p7, %p1135_p6 }
  0x15   :  { %p1138_p9 = pnand %p1137_p8, %p1131_p5 }
  0x17   :  { %1141 = shalt.err (!%p1138_p9)
}
  0x18   :  { %34 = dma.hbm_to_vmem [thread:$0]  %s1405_s1, 1024, %s29_s20, [#allocation6], %s1169_s15, %s1169_s15, %s1170_s16  }
  0x19   :  { %1162 = dma.done.wait [#allocation3], 4096  }
  0x1a   :  { %1163 = vsyncadd [#allocation3], 4294963200 }
  0x1b   :  { %1164 = dma.done.wait [#allocation6], 1024  }
  0x1c   :  { %1165 = vsyncadd [#allocation6], 4294966272  ;;  %v1062_v0 = vld [vmem:[#allocation5 + $0x38] sm:$0xff]   ;;  %v1063_v1 = vld [vmem:[#allocation5 + $0x30] sm:$0xff]   ;;  %v661_v40 = vlaneseq }
  0x1d   :  { %959 = vmatprep.subr.bf16.mxu0 %v1062_v0  ;;  %1039 = vmatprep.subr.bf16.mxu1 %v1062_v0  ;;  %v1064_v2 = vld [vmem:[#allocation5 + $0x28] sm:$0xff]   ;;  %v1065_v3 = vld [vmem:[#allocation5 + $0x20] sm:$0xff]   ;;  %v1066_v6 = vld [vmem:[#allocation5 + $0x18] sm:$0xff]  }
  0x1e   :  { %960 = vmatpush3.bf16.msra.mxu0 %v1062_v0  ;;  %1047 = vmatpush3.bf16.msra.mxu1 %v1062_v0  ;;  %v1070_v4 = vld [vmem:[#allocation2] sm:$0xff]   ;;  %v1067_v7 = vld [vmem:[#allocation5 + $0x10] sm:$0xff]   ;;  %v1068_v8 = vld [vmem:[#allocation5 + $0x8] sm:$0xff]   ;;  %v1206_v42 = vand.u32 127, %v661_v40 }
  0x1f   :  { %961 = vmatprep.subr.bf16.mxu0 %v1063_v1  ;;  %1040 = vmatprep.subr.bf16.mxu1 %v1063_v1  ;;  %v1071_v5 = vld [vmem:[#allocation2 + $0x80] sm:$0xff]   ;;  %v1072_v10 = vld [vmem:[#allocation2 + $0x8] sm:$0xff]   ;;  %v1074_v12 = vld [vmem:[#allocation2 + $0x10] sm:$0xff]  }
  0x20   :  { %975 = vmatprep.mubr.bf16.mxu0 %v1070_v4  ;;  %1007 = vmatprep.mubr.bf16.mxu1 %v1071_v5  ;;  %v1069_v9 = vld [vmem:[#allocation5] sm:$0xff]   ;;  %v1073_v11 = vld [vmem:[#allocation2 + $0x88] sm:$0xff]   ;;  %v1075_v13 = vld [vmem:[#allocation2 + $0x90] sm:$0xff]   ;;  %vm665_vm0 = vcmp.lt.s32.totalorder %v1206_v42, 64 }
  0x21   :  { %v1076_v14 = vld [vmem:[#allocation2 + $0x18] sm:$0xff]   ;;  %v1078_v16 = vld [vmem:[#allocation2 + $0x20] sm:$0xff]   ;;  %v1080_v18 = vld [vmem:[#allocation2 + $0x28] sm:$0xff]  }
  0x22   :  { %962 = vmatpush3.bf16.msra.mxu0 %v1063_v1  ;;  %1048 = vmatpush3.bf16.msra.mxu1 %v1063_v1  ;;  %v1077_v15 = vld [vmem:[#allocation2 + $0x98] sm:$0xff]   ;;  %v1079_v17 = vld [vmem:[#allocation2 + $0xa0] sm:$0xff]   ;;  %v1081_v19 = vld [vmem:[#allocation2 + $0xa8] sm:$0xff]  }
  0x23   :  { %963 = vmatprep.subr.bf16.mxu0 %v1064_v2  ;;  %1041 = vmatprep.subr.bf16.mxu1 %v1064_v2  ;;  %v1082_v20 = vld [vmem:[#allocation2 + $0x30] sm:$0xff]   ;;  %v1084_v22 = vld [vmem:[#allocation2 + $0x38] sm:$0xff]   ;;  %v1086_v24 = vld [vmem:[#allocation2 + $0x40] sm:$0xff]  }
  0x24   :  { %v1083_v21 = vld [vmem:[#allocation2 + $0xb0] sm:$0xff]   ;;  %v1085_v23 = vld [vmem:[#allocation2 + $0xb8] sm:$0xff]   ;;  %v1087_v25 = vld [vmem:[#allocation2 + $0xc0] sm:$0xff]  }
  0x25   :  { %v1088_v26 = vld [vmem:[#allocation2 + $0x48] sm:$0xff]   ;;  %v1090_v28 = vld [vmem:[#allocation2 + $0x50] sm:$0xff]   ;;  %v1092_v30 = vld [vmem:[#allocation2 + $0x58] sm:$0xff]  }
  0x26   :  { %964 = vmatpush3.bf16.msra.mxu0 %v1064_v2  ;;  %1049 = vmatpush3.bf16.msra.mxu1 %v1064_v2  ;;  %v1089_v27 = vld [vmem:[#allocation2 + $0xc8] sm:$0xff]   ;;  %v1091_v29 = vld [vmem:[#allocation2 + $0xd0] sm:$0xff]   ;;  %v1093_v31 = vld [vmem:[#allocation2 + $0xd8] sm:$0xff]  }
  0x27   :  { %965 = vmatprep.subr.bf16.mxu0 %v1065_v3  ;;  %1042 = vmatprep.subr.bf16.mxu1 %v1065_v3  ;;  %v1094_v32 = vld [vmem:[#allocation2 + $0x60] sm:$0xff]   ;;  %v1096_v34 = vld [vmem:[#allocation2 + $0x68] sm:$0xff]   ;;  %v1098_v36 = vld [vmem:[#allocation2 + $0x70] sm:$0xff]  }
  0x28   :  { %v1095_v33 = vld [vmem:[#allocation2 + $0xe0] sm:$0xff]   ;;  %v1097_v35 = vld [vmem:[#allocation2 + $0xe8] sm:$0xff]   ;;  %v1099_v37 = vld [vmem:[#allocation2 + $0xf0] sm:$0xff]  }
  0x29   :  { %v1100_v38 = vld [vmem:[#allocation2 + $0x78] sm:$0xff]   ;;  %v1204_v41 = vld [vmem:[%s1406_s2] ss:$0 sm:$0xff]  ;;  %s1172_s2 = smov [#allocation7]  }
  0x2a   :  { %966 = vmatpush3.bf16.msra.mxu0 %v1065_v3  ;;  %1050 = vmatpush3.bf16.msra.mxu1 %v1065_v3  ;;  %v1101_v39 = vld [vmem:[#allocation2 + $0xf8] sm:$0xff]   ;;  %s865_s24 = sshll.u32 %s1172_s2, 4  ;;  %s866_s24 = int_to_ptr.vmem [resolvable:$true] %s865_s24 }
  0x2b   :  { %967 = vmatprep.subr.bf16.mxu0 %v1066_v6  ;;  %1043 = vmatprep.subr.bf16.mxu1 %v1066_v6  ;;  %s1142_s25 = scalar_lea.vmem %s866_s24, 8192  ;;  %p1147_p11 = scmp.lt.s32.totalorder %s866_s24, %s866_s24 }
  0x2c   :  { %p1143_p10 = scmp.ne.s32.totalorder %s866_s24, %s1142_s25  ;;  %p1148_p12 = scmp.lt.s32.totalorder %s1142_s25, %s1142_s25 }
  0x2e   :  { %968 = vmatpush3.bf16.msra.mxu0 %v1066_v6  ;;  %1051 = vmatpush3.bf16.msra.mxu1 %v1066_v6  ;;  %p1149_p13 = por %p1148_p12, %p1147_p11 }
  0x2f   :  { %969 = vmatprep.subr.bf16.mxu0 %v1067_v7  ;;  %1044 = vmatprep.subr.bf16.mxu1 %v1067_v7 }
  0x30   :  { %p1150_p0 = pnand %p1149_p13, %p1143_p10 }
  0x32   :  { %970 = vmatpush3.bf16.msra.mxu0 %v1067_v7  ;;  %1052 = vmatpush3.bf16.msra.mxu1 %v1067_v7 }
  0x33   :  { %971 = vmatprep.subr.bf16.mxu0 %v1068_v8  ;;  %1045 = vmatprep.subr.bf16.mxu1 %v1068_v8 }
  0x36   :  { %972 = vmatpush3.bf16.msra.mxu0 %v1068_v8  ;;  %1053 = vmatpush3.bf16.msra.mxu1 %v1068_v8 }
  0x37   :  { %973 = vmatprep.subr.bf16.mxu0 %v1069_v9  ;;  %1046 = vmatprep.subr.bf16.mxu1 %v1069_v9 }
  0x3a   :  { %974 = vmatpush3.bf16.msra.mxu0 %v1069_v9  ;;  %1054 = vmatpush3.bf16.msra.mxu1 %v1069_v9 }
  0x3d   :  { %976 = vmatmul.mubr.bf16.vlgmr.msra.gmra.mxu0 %v1072_v10  ;;  %1008 = vmatmul.mubr.bf16.vlgmr.msra.gmra.mxu1 %v1073_v11 }
  0x3e   :  { %979 = vmatprep.mubr.bf16.mxu0 %v1074_v12  ;;  %1011 = vmatprep.mubr.bf16.mxu1 %v1075_v13 }
  0x45   :  { %980 = vmatmul.mubr.bf16.gmra.mxu0 %v1076_v14  ;;  %1012 = vmatmul.mubr.bf16.gmra.mxu1 %v1077_v15 }
  0x46   :  { %983 = vmatprep.mubr.bf16.mxu0 %v1078_v16  ;;  %1015 = vmatprep.mubr.bf16.mxu1 %v1079_v17 }
  0x4d   :  { %984 = vmatmul.mubr.bf16.gmra.mxu0 %v1080_v18  ;;  %1016 = vmatmul.mubr.bf16.gmra.mxu1 %v1081_v19 }
  0x4e   :  { %987 = vmatprep.mubr.bf16.mxu0 %v1082_v20  ;;  %1019 = vmatprep.mubr.bf16.mxu1 %v1083_v21 }
  0x55   :  { %988 = vmatmul.mubr.bf16.gmra.mxu0 %v1084_v22  ;;  %1020 = vmatmul.mubr.bf16.gmra.mxu1 %v1085_v23 }
  0x56   :  { %991 = vmatprep.mubr.bf16.mxu0 %v1086_v24  ;;  %1023 = vmatprep.mubr.bf16.mxu1 %v1087_v25 }
  0x5d   :  { %992 = vmatmul.mubr.bf16.gmra.mxu0 %v1088_v26  ;;  %1024 = vmatmul.mubr.bf16.gmra.mxu1 %v1089_v27 }
  0x5e   :  { %995 = vmatprep.mubr.bf16.mxu0 %v1090_v28  ;;  %1027 = vmatprep.mubr.bf16.mxu1 %v1091_v29 }
  0x65   :  { %996 = vmatmul.mubr.bf16.gmra.mxu0 %v1092_v30  ;;  %1028 = vmatmul.mubr.bf16.gmra.mxu1 %v1093_v31 }
  0x66   :  { %999 = vmatprep.mubr.bf16.mxu0 %v1094_v32  ;;  %1031 = vmatprep.mubr.bf16.mxu1 %v1095_v33 }
  0x6d   :  { %1000 = vmatmul.mubr.bf16.gmra.mxu0 %v1096_v34  ;;  %1032 = vmatmul.mubr.bf16.gmra.mxu1 %v1097_v35 }
  0x6e   :  { %1003 = vmatprep.mubr.bf16.mxu0 %v1098_v36  ;;  %1035 = vmatprep.mubr.bf16.mxu1 %v1099_v37 }
  0x75   :  { %1004 = vmatmul.mubr.bf16.gmra.mxu0 %v1100_v38  ;;  %1036 = vmatmul.mubr.bf16.gmra.mxu1 %v1101_v39 }
  0xfd   :  { %v977_v43 = vpop.f32.mrf.mxu0  ;;  %v1009_v44 = vpop.f32.mrf.mxu1 }
  0xfe   :  { %v414_v45 = vadd.f32 %v977_v43, %v1204_v41  ;;  %v542_v46 = vadd.f32 %v1009_v44, %v1204_v41 }
  0xff   :  { %v405_v47 = vpop.f32.mrf.mxu0  ;;  %v533_v48 = vpop.f32.mrf.mxu1 }
 0x100   :  { %v668_v49 = vmax.f32 %v414_v45, 0.0  ;;  %v700_v50 = vmax.f32 %v542_v46, 0.0  ;;  %v406_v51 = vadd.f32 %v1204_v41, %v405_v47  ;;  %v534_v52 = vadd.f32 %v1204_v41, %v533_v48 }
 0x101   :  { %v978_v53 = vpop.f32.mrf.mxu0  ;;  %v1010_v54 = vpop.f32.mrf.mxu1 }
 0x102   :  { %v734_v55 = vsel %vm665_vm0, %v668_v49, %v414_v45  ;;  %v766_v56 = vsel %vm665_vm0, %v700_v50, %v542_v46  ;;  %v666_v57 = vmax.f32 %v406_v51, 0.0  ;;  %v698_v58 = vmax.f32 %v534_v52, 0.0 }
 0x103   :  { %798 = vst [vmem:[#allocation7 + $0x10] sm:$0xff] %v734_v55  ;;  %830 = vst [vmem:[#allocation7 + $0x110] sm:$0xff] %v766_v56  ;;  %v417_v59 = vadd.f32 %v978_v53, %v1204_v41  ;;  %v545_v60 = vadd.f32 %v1010_v54, %v1204_v41  ;;  %v408_v61 = vpop.f32.mrf.mxu0  ;;  %v536_v62 = vpop.f32.mrf.mxu1 }
 0x104   :  { %v732_v63 = vsel %vm665_vm0, %v666_v57, %v406_v51  ;;  %v764_v0 = vsel %vm665_vm0, %v698_v58, %v534_v52  ;;  %v409_v1 = vadd.f32 %v1204_v41, %v408_v61  ;;  %v537_v2 = vadd.f32 %v1204_v41, %v536_v62 }
 0x105   :  { %796 = vst [vmem:[#allocation7] sm:$0xff] %v732_v63  ;;  %828 = vst [vmem:[#allocation7 + $0x100] sm:$0xff] %v764_v0  ;;  %v669_v3 = vmax.f32 %v417_v59, 0.0  ;;  %v701_v4 = vmax.f32 %v545_v60, 0.0  ;;  %v981_v5 = vpop.f32.mrf.mxu0  ;;  %v1013_v6 = vpop.f32.mrf.mxu1 }
 0x106   :  { %v667_v7 = vmax.f32 %v409_v1, 0.0  ;;  %v699_v8 = vmax.f32 %v537_v2, 0.0  ;;  %v430_v9 = vadd.f32 %v981_v5, %v1204_v41  ;;  %v558_v10 = vadd.f32 %v1013_v6, %v1204_v41 }
 0x107   :  { %v735_v11 = vsel %vm665_vm0, %v669_v3, %v417_v59  ;;  %v767_v12 = vsel %vm665_vm0, %v701_v4, %v545_v60  ;;  %v421_v13 = vpop.f32.mrf.mxu0  ;;  %v549_v14 = vpop.f32.mrf.mxu1 }
 0x108   :  { %799 = vst [vmem:[#allocation7 + $0x18] sm:$0xff] %v735_v11  ;;  %831 = vst [vmem:[#allocation7 + $0x118] sm:$0xff] %v767_v12  ;;  %v733_v15 = vsel %vm665_vm0, %v667_v7, %v409_v1  ;;  %v765_v16 = vsel %vm665_vm0, %v699_v8, %v537_v2  ;;  %v672_v17 = vmax.f32 %v430_v9, 0.0  ;;  %v704_v18 = vmax.f32 %v558_v10, 0.0 }
 0x109   :  { %797 = vst [vmem:[#allocation7 + $0x8] sm:$0xff] %v733_v15  ;;  %829 = vst [vmem:[#allocation7 + $0x108] sm:$0xff] %v765_v16  ;;  %v422_v19 = vadd.f32 %v1204_v41, %v421_v13  ;;  %v550_v20 = vadd.f32 %v1204_v41, %v549_v14  ;;  %v982_v21 = vpop.f32.mrf.mxu0  ;;  %v1014_v22 = vpop.f32.mrf.mxu1 }
 0x10a   :  { %v738_v23 = vsel %vm665_vm0, %v672_v17, %v430_v9  ;;  %v770_v24 = vsel %vm665_vm0, %v704_v18, %v558_v10  ;;  %v433_v25 = vadd.f32 %v982_v21, %v1204_v41  ;;  %v561_v26 = vadd.f32 %v1014_v22, %v1204_v41 }
 0x10b   :  { %802 = vst [vmem:[#allocation7 + $0x30] sm:$0xff] %v738_v23  ;;  %834 = vst [vmem:[#allocation7 + $0x130] sm:$0xff] %v770_v24  ;;  %v670_v27 = vmax.f32 %v422_v19, 0.0  ;;  %v702_v28 = vmax.f32 %v550_v20, 0.0  ;;  %v424_v29 = vpop.f32.mrf.mxu0  ;;  %v552_v30 = vpop.f32.mrf.mxu1 }
 0x10c   :  { %v673_v31 = vmax.f32 %v433_v25, 0.0  ;;  %v705_v32 = vmax.f32 %v561_v26, 0.0  ;;  %v425_v33 = vadd.f32 %v1204_v41, %v424_v29  ;;  %v553_v34 = vadd.f32 %v1204_v41, %v552_v30 }
 0x10d   :  { %v736_v35 = vsel %vm665_vm0, %v670_v27, %v422_v19  ;;  %v768_v36 = vsel %vm665_vm0, %v702_v28, %v550_v20  ;;  %v985_v37 = vpop.f32.mrf.mxu0  ;;  %v1017_v38 = vpop.f32.mrf.mxu1 }
 0x10e   :  { %800 = vst [vmem:[#allocation7 + $0x20] sm:$0xff] %v736_v35  ;;  %832 = vst [vmem:[#allocation7 + $0x120] sm:$0xff] %v768_v36  ;;  %v739_v39 = vsel %vm665_vm0, %v673_v31, %v433_v25  ;;  %v771_v40 = vsel %vm665_vm0, %v705_v32, %v561_v26  ;;  %v671_v43 = vmax.f32 %v425_v33, 0.0  ;;  %v703_v44 = vmax.f32 %v553_v34, 0.0 }
 0x10f   :  { %803 = vst [vmem:[#allocation7 + $0x38] sm:$0xff] %v739_v39  ;;  %835 = vst [vmem:[#allocation7 + $0x138] sm:$0xff] %v771_v40  ;;  %v446_v45 = vadd.f32 %v985_v37, %v1204_v41  ;;  %v574_v46 = vadd.f32 %v1017_v38, %v1204_v41  ;;  %v437_v47 = vpop.f32.mrf.mxu0  ;;  %v565_v48 = vpop.f32.mrf.mxu1 }
 0x110   :  { %v737_v49 = vsel %vm665_vm0, %v671_v43, %v425_v33  ;;  %v769_v50 = vsel %vm665_vm0, %v703_v44, %v553_v34  ;;  %v438_v51 = vadd.f32 %v1204_v41, %v437_v47  ;;  %v566_v52 = vadd.f32 %v1204_v41, %v565_v48 }
 0x111   :  { %801 = vst [vmem:[#allocation7 + $0x28] sm:$0xff] %v737_v49  ;;  %833 = vst [vmem:[#allocation7 + $0x128] sm:$0xff] %v769_v50  ;;  %v676_v53 = vmax.f32 %v446_v45, 0.0  ;;  %v708_v54 = vmax.f32 %v574_v46, 0.0  ;;  %v986_v55 = vpop.f32.mrf.mxu0  ;;  %v1018_v56 = vpop.f32.mrf.mxu1 }
 0x112   :  { %v674_v57 = vmax.f32 %v438_v51, 0.0  ;;  %v706_v58 = vmax.f32 %v566_v52, 0.0  ;;  %v449_v59 = vadd.f32 %v986_v55, %v1204_v41  ;;  %v577_v60 = vadd.f32 %v1018_v56, %v1204_v41 }
 0x113   :  { %v742_v61 = vsel %vm665_vm0, %v676_v53, %v446_v45  ;;  %v774_v62 = vsel %vm665_vm0, %v708_v54, %v574_v46  ;;  %v440_v63 = vpop.f32.mrf.mxu0  ;;  %v568_v0 = vpop.f32.mrf.mxu1 }
 0x114   :  { %806 = vst [vmem:[#allocation7 + $0x50] sm:$0xff] %v742_v61  ;;  %838 = vst [vmem:[#allocation7 + $0x150] sm:$0xff] %v774_v62  ;;  %v740_v1 = vsel %vm665_vm0, %v674_v57, %v438_v51  ;;  %v772_v2 = vsel %vm665_vm0, %v706_v58, %v566_v52  ;;  %v677_v3 = vmax.f32 %v449_v59, 0.0  ;;  %v709_v4 = vmax.f32 %v577_v60, 0.0 }
 0x115   :  { %804 = vst [vmem:[#allocation7 + $0x40] sm:$0xff] %v740_v1  ;;  %836 = vst [vmem:[#allocation7 + $0x140] sm:$0xff] %v772_v2  ;;  %v441_v5 = vadd.f32 %v1204_v41, %v440_v63  ;;  %v569_v6 = vadd.f32 %v1204_v41, %v568_v0  ;;  %v989_v7 = vpop.f32.mrf.mxu0  ;;  %v1021_v8 = vpop.f32.mrf.mxu1 }
 0x116   :  { %v743_v9 = vsel %vm665_vm0, %v677_v3, %v449_v59  ;;  %v775_v10 = vsel %vm665_vm0, %v709_v4, %v577_v60  ;;  %v462_v11 = vadd.f32 %v989_v7, %v1204_v41  ;;  %v590_v12 = vadd.f32 %v1021_v8, %v1204_v41 }
 0x117   :  { %807 = vst [vmem:[#allocation7 + $0x58] sm:$0xff] %v743_v9  ;;  %839 = vst [vmem:[#allocation7 + $0x158] sm:$0xff] %v775_v10  ;;  %v675_v13 = vmax.f32 %v441_v5, 0.0  ;;  %v707_v14 = vmax.f32 %v569_v6, 0.0  ;;  %v453_v15 = vpop.f32.mrf.mxu0  ;;  %v581_v16 = vpop.f32.mrf.mxu1 }
 0x118   :  { %v680_v17 = vmax.f32 %v462_v11, 0.0  ;;  %v712_v18 = vmax.f32 %v590_v12, 0.0  ;;  %v454_v19 = vadd.f32 %v1204_v41, %v453_v15  ;;  %v582_v20 = vadd.f32 %v1204_v41, %v581_v16 }
 0x119   :  { %v741_v21 = vsel %vm665_vm0, %v675_v13, %v441_v5  ;;  %v773_v22 = vsel %vm665_vm0, %v707_v14, %v569_v6  ;;  %v990_v23 = vpop.f32.mrf.mxu0  ;;  %v1022_v24 = vpop.f32.mrf.mxu1 }
 0x11a   :  { %805 = vst [vmem:[#allocation7 + $0x48] sm:$0xff] %v741_v21  ;;  %837 = vst [vmem:[#allocation7 + $0x148] sm:$0xff] %v773_v22  ;;  %v746_v25 = vsel %vm665_vm0, %v680_v17, %v462_v11  ;;  %v778_v26 = vsel %vm665_vm0, %v712_v18, %v590_v12  ;;  %v678_v27 = vmax.f32 %v454_v19, 0.0  ;;  %v710_v28 = vmax.f32 %v582_v20, 0.0 }
 0x11b   :  { %810 = vst [vmem:[#allocation7 + $0x70] sm:$0xff] %v746_v25  ;;  %842 = vst [vmem:[#allocation7 + $0x170] sm:$0xff] %v778_v26  ;;  %v465_v29 = vadd.f32 %v990_v23, %v1204_v41  ;;  %v593_v30 = vadd.f32 %v1022_v24, %v1204_v41  ;;  %v456_v31 = vpop.f32.mrf.mxu0  ;;  %v584_v32 = vpop.f32.mrf.mxu1 }
 0x11c   :  { %v744_v33 = vsel %vm665_vm0, %v678_v27, %v454_v19  ;;  %v776_v34 = vsel %vm665_vm0, %v710_v28, %v582_v20  ;;  %v457_v35 = vadd.f32 %v1204_v41, %v456_v31  ;;  %v585_v36 = vadd.f32 %v1204_v41, %v584_v32 }
 0x11d   :  { %808 = vst [vmem:[#allocation7 + $0x60] sm:$0xff] %v744_v33  ;;  %840 = vst [vmem:[#allocation7 + $0x160] sm:$0xff] %v776_v34  ;;  %v681_v37 = vmax.f32 %v465_v29, 0.0  ;;  %v713_v38 = vmax.f32 %v593_v30, 0.0  ;;  %v993_v39 = vpop.f32.mrf.mxu0  ;;  %v1025_v40 = vpop.f32.mrf.mxu1 }
 0x11e   :  { %v679_v43 = vmax.f32 %v457_v35, 0.0  ;;  %v711_v44 = vmax.f32 %v585_v36, 0.0  ;;  %v478_v45 = vadd.f32 %v993_v39, %v1204_v41  ;;  %v606_v46 = vadd.f32 %v1025_v40, %v1204_v41 }
 0x11f   :  { %v747_v47 = vsel %vm665_vm0, %v681_v37, %v465_v29  ;;  %v779_v48 = vsel %vm665_vm0, %v713_v38, %v593_v30  ;;  %v469_v49 = vpop.f32.mrf.mxu0  ;;  %v597_v50 = vpop.f32.mrf.mxu1 }
 0x120   :  { %811 = vst [vmem:[#allocation7 + $0x78] sm:$0xff] %v747_v47  ;;  %843 = vst [vmem:[#allocation7 + $0x178] sm:$0xff] %v779_v48  ;;  %v745_v51 = vsel %vm665_vm0, %v679_v43, %v457_v35  ;;  %v777_v52 = vsel %vm665_vm0, %v711_v44, %v585_v36  ;;  %v684_v53 = vmax.f32 %v478_v45, 0.0  ;;  %v716_v54 = vmax.f32 %v606_v46, 0.0 }
 0x121   :  { %809 = vst [vmem:[#allocation7 + $0x68] sm:$0xff] %v745_v51  ;;  %841 = vst [vmem:[#allocation7 + $0x168] sm:$0xff] %v777_v52  ;;  %v470_v55 = vadd.f32 %v1204_v41, %v469_v49  ;;  %v598_v56 = vadd.f32 %v1204_v41, %v597_v50  ;;  %v994_v57 = vpop.f32.mrf.mxu0  ;;  %v1026_v58 = vpop.f32.mrf.mxu1 }
 0x122   :  { %v750_v59 = vsel %vm665_vm0, %v684_v53, %v478_v45  ;;  %v782_v60 = vsel %vm665_vm0, %v716_v54, %v606_v46  ;;  %v481_v61 = vadd.f32 %v994_v57, %v1204_v41  ;;  %v609_v62 = vadd.f32 %v1026_v58, %v1204_v41 }
 0x123   :  { %814 = vst [vmem:[#allocation7 + $0x90] sm:$0xff] %v750_v59  ;;  %846 = vst [vmem:[#allocation7 + $0x190] sm:$0xff] %v782_v60  ;;  %v682_v63 = vmax.f32 %v470_v55, 0.0  ;;  %v714_v0 = vmax.f32 %v598_v56, 0.0  ;;  %v472_v1 = vpop.f32.mrf.mxu0  ;;  %v600_v2 = vpop.f32.mrf.mxu1 }
 0x124   :  { %v685_v3 = vmax.f32 %v481_v61, 0.0  ;;  %v717_v4 = vmax.f32 %v609_v62, 0.0  ;;  %v473_v5 = vadd.f32 %v1204_v41, %v472_v1  ;;  %v601_v6 = vadd.f32 %v1204_v41, %v600_v2 }
 0x125   :  { %v748_v7 = vsel %vm665_vm0, %v682_v63, %v470_v55  ;;  %v780_v8 = vsel %vm665_vm0, %v714_v0, %v598_v56  ;;  %v997_v9 = vpop.f32.mrf.mxu0  ;;  %v1029_v10 = vpop.f32.mrf.mxu1 }
 0x126   :  { %812 = vst [vmem:[#allocation7 + $0x80] sm:$0xff] %v748_v7  ;;  %844 = vst [vmem:[#allocation7 + $0x180] sm:$0xff] %v780_v8  ;;  %v751_v11 = vsel %vm665_vm0, %v685_v3, %v481_v61  ;;  %v783_v12 = vsel %vm665_vm0, %v717_v4, %v609_v62  ;;  %v683_v13 = vmax.f32 %v473_v5, 0.0  ;;  %v715_v14 = vmax.f32 %v601_v6, 0.0 }
 0x127   :  { %815 = vst [vmem:[#allocation7 + $0x98] sm:$0xff] %v751_v11  ;;  %847 = vst [vmem:[#allocation7 + $0x198] sm:$0xff] %v783_v12  ;;  %v494_v15 = vadd.f32 %v997_v9, %v1204_v41  ;;  %v622_v16 = vadd.f32 %v1029_v10, %v1204_v41  ;;  %v485_v17 = vpop.f32.mrf.mxu0  ;;  %v613_v18 = vpop.f32.mrf.mxu1 }
 0x128   :  { %v749_v19 = vsel %vm665_vm0, %v683_v13, %v473_v5  ;;  %v781_v20 = vsel %vm665_vm0, %v715_v14, %v601_v6  ;;  %v486_v21 = vadd.f32 %v1204_v41, %v485_v17  ;;  %v614_v22 = vadd.f32 %v1204_v41, %v613_v18 }
 0x129   :  { %813 = vst [vmem:[#allocation7 + $0x88] sm:$0xff] %v749_v19  ;;  %845 = vst [vmem:[#allocation7 + $0x188] sm:$0xff] %v781_v20  ;;  %v688_v23 = vmax.f32 %v494_v15, 0.0  ;;  %v720_v24 = vmax.f32 %v622_v16, 0.0  ;;  %v998_v25 = vpop.f32.mrf.mxu0  ;;  %v1030_v26 = vpop.f32.mrf.mxu1 }
 0x12a   :  { %v686_v27 = vmax.f32 %v486_v21, 0.0  ;;  %v718_v28 = vmax.f32 %v614_v22, 0.0  ;;  %v497_v29 = vadd.f32 %v998_v25, %v1204_v41  ;;  %v625_v30 = vadd.f32 %v1030_v26, %v1204_v41 }
 0x12b   :  { %v754_v31 = vsel %vm665_vm0, %v688_v23, %v494_v15  ;;  %v786_v32 = vsel %vm665_vm0, %v720_v24, %v622_v16  ;;  %v488_v33 = vpop.f32.mrf.mxu0  ;;  %v616_v34 = vpop.f32.mrf.mxu1 }
 0x12c   :  { %818 = vst [vmem:[#allocation7 + $0xb0] sm:$0xff] %v754_v31  ;;  %850 = vst [vmem:[#allocation7 + $0x1b0] sm:$0xff] %v786_v32  ;;  %v752_v35 = vsel %vm665_vm0, %v686_v27, %v486_v21  ;;  %v784_v36 = vsel %vm665_vm0, %v718_v28, %v614_v22  ;;  %v689_v37 = vmax.f32 %v497_v29, 0.0  ;;  %v721_v38 = vmax.f32 %v625_v30, 0.0 }
 0x12d   :  { %816 = vst [vmem:[#allocation7 + $0xa0] sm:$0xff] %v752_v35  ;;  %848 = vst [vmem:[#allocation7 + $0x1a0] sm:$0xff] %v784_v36  ;;  %v489_v39 = vadd.f32 %v1204_v41, %v488_v33  ;;  %v617_v40 = vadd.f32 %v1204_v41, %v616_v34  ;;  %v1001_v43 = vpop.f32.mrf.mxu0  ;;  %v1033_v44 = vpop.f32.mrf.mxu1 }
 0x12e   :  { %v755_v45 = vsel %vm665_vm0, %v689_v37, %v497_v29  ;;  %v787_v46 = vsel %vm665_vm0, %v721_v38, %v625_v30  ;;  %v510_v47 = vadd.f32 %v1001_v43, %v1204_v41  ;;  %v638_v48 = vadd.f32 %v1033_v44, %v1204_v41 }
 0x12f   :  { %819 = vst [vmem:[#allocation7 + $0xb8] sm:$0xff] %v755_v45  ;;  %851 = vst [vmem:[#allocation7 + $0x1b8] sm:$0xff] %v787_v46  ;;  %v687_v49 = vmax.f32 %v489_v39, 0.0  ;;  %v719_v50 = vmax.f32 %v617_v40, 0.0  ;;  %v501_v51 = vpop.f32.mrf.mxu0  ;;  %v629_v52 = vpop.f32.mrf.mxu1 }
 0x130   :  { %v692_v53 = vmax.f32 %v510_v47, 0.0  ;;  %v724_v54 = vmax.f32 %v638_v48, 0.0  ;;  %v502_v55 = vadd.f32 %v1204_v41, %v501_v51  ;;  %v630_v56 = vadd.f32 %v1204_v41, %v629_v52 }
 0x131   :  { %v753_v57 = vsel %vm665_vm0, %v687_v49, %v489_v39  ;;  %v785_v58 = vsel %vm665_vm0, %v719_v50, %v617_v40  ;;  %v1002_v59 = vpop.f32.mrf.mxu0  ;;  %v1034_v60 = vpop.f32.mrf.mxu1 }
 0x132   :  { %817 = vst [vmem:[#allocation7 + $0xa8] sm:$0xff] %v753_v57  ;;  %849 = vst [vmem:[#allocation7 + $0x1a8] sm:$0xff] %v785_v58  ;;  %v758_v61 = vsel %vm665_vm0, %v692_v53, %v510_v47  ;;  %v790_v62 = vsel %vm665_vm0, %v724_v54, %v638_v48  ;;  %v690_v63 = vmax.f32 %v502_v55, 0.0  ;;  %v722_v0 = vmax.f32 %v630_v56, 0.0 }
 0x133   :  { %822 = vst [vmem:[#allocation7 + $0xd0] sm:$0xff] %v758_v61  ;;  %854 = vst [vmem:[#allocation7 + $0x1d0] sm:$0xff] %v790_v62  ;;  %v513_v1 = vadd.f32 %v1002_v59, %v1204_v41  ;;  %v641_v2 = vadd.f32 %v1034_v60, %v1204_v41  ;;  %v504_v3 = vpop.f32.mrf.mxu0  ;;  %v632_v4 = vpop.f32.mrf.mxu1 }
 0x134   :  { %v756_v5 = vsel %vm665_vm0, %v690_v63, %v502_v55  ;;  %v788_v6 = vsel %vm665_vm0, %v722_v0, %v630_v56  ;;  %v505_v7 = vadd.f32 %v1204_v41, %v504_v3  ;;  %v633_v8 = vadd.f32 %v1204_v41, %v632_v4 }
 0x135   :  { %820 = vst [vmem:[#allocation7 + $0xc0] sm:$0xff] %v756_v5  ;;  %852 = vst [vmem:[#allocation7 + $0x1c0] sm:$0xff] %v788_v6  ;;  %v693_v9 = vmax.f32 %v513_v1, 0.0  ;;  %v725_v10 = vmax.f32 %v641_v2, 0.0  ;;  %v1005_v11 = vpop.f32.mrf.mxu0  ;;  %v1037_v12 = vpop.f32.mrf.mxu1 }
 0x136   :  { %v691_v13 = vmax.f32 %v505_v7, 0.0  ;;  %v723_v14 = vmax.f32 %v633_v8, 0.0  ;;  %v526_v15 = vadd.f32 %v1005_v11, %v1204_v41  ;;  %v654_v16 = vadd.f32 %v1037_v12, %v1204_v41 }
 0x137   :  { %v759_v17 = vsel %vm665_vm0, %v693_v9, %v513_v1  ;;  %v791_v18 = vsel %vm665_vm0, %v725_v10, %v641_v2  ;;  %v517_v19 = vpop.f32.mrf.mxu0  ;;  %v645_v20 = vpop.f32.mrf.mxu1 }
 0x138   :  { %823 = vst [vmem:[#allocation7 + $0xd8] sm:$0xff] %v759_v17  ;;  %855 = vst [vmem:[#allocation7 + $0x1d8] sm:$0xff] %v791_v18  ;;  %v757_v21 = vsel %vm665_vm0, %v691_v13, %v505_v7  ;;  %v789_v22 = vsel %vm665_vm0, %v723_v14, %v633_v8  ;;  %v696_v23 = vmax.f32 %v526_v15, 0.0  ;;  %v728_v24 = vmax.f32 %v654_v16, 0.0 }
 0x139   :  { %821 = vst [vmem:[#allocation7 + $0xc8] sm:$0xff] %v757_v21  ;;  %853 = vst [vmem:[#allocation7 + $0x1c8] sm:$0xff] %v789_v22  ;;  %v518_v25 = vadd.f32 %v1204_v41, %v517_v19  ;;  %v646_v26 = vadd.f32 %v1204_v41, %v645_v20  ;;  %v1006_v27 = vpop.f32.mrf.mxu0  ;;  %v1038_v28 = vpop.f32.mrf.mxu1 }
 0x13a   :  { %v762_v29 = vsel %vm665_vm0, %v696_v23, %v526_v15  ;;  %v794_v30 = vsel %vm665_vm0, %v728_v24, %v654_v16  ;;  %v529_v31 = vadd.f32 %v1006_v27, %v1204_v41  ;;  %v657_v32 = vadd.f32 %v1038_v28, %v1204_v41 }
 0x13b   :  { %826 = vst [vmem:[#allocation7 + $0xf0] sm:$0xff] %v762_v29  ;;  %858 = vst [vmem:[#allocation7 + $0x1f0] sm:$0xff] %v794_v30  ;;  %v694_v33 = vmax.f32 %v518_v25, 0.0  ;;  %v726_v34 = vmax.f32 %v646_v26, 0.0  ;;  %v520_v35 = vpop.f32.mrf.mxu0  ;;  %v648_v36 = vpop.f32.mrf.mxu1 }
 0x13c   :  { %v697_v37 = vmax.f32 %v529_v31, 0.0  ;;  %v729_v38 = vmax.f32 %v657_v32, 0.0  ;;  %v521_v39 = vadd.f32 %v1204_v41, %v520_v35  ;;  %v649_v40 = vadd.f32 %v1204_v41, %v648_v36 }
 0x13d   :  { %v760_v43 = vsel %vm665_vm0, %v694_v33, %v518_v25  ;;  %v792_v44 = vsel %vm665_vm0, %v726_v34, %v646_v26 }
 0x13e   :  { %824 = vst [vmem:[#allocation7 + $0xe0] sm:$0xff] %v760_v43  ;;  %856 = vst [vmem:[#allocation7 + $0x1e0] sm:$0xff] %v792_v44  ;;  %v763_v45 = vsel %vm665_vm0, %v697_v37, %v529_v31  ;;  %v795_v46 = vsel %vm665_vm0, %v729_v38, %v657_v32  ;;  %v695_v47 = vmax.f32 %v521_v39, 0.0  ;;  %v727_v48 = vmax.f32 %v649_v40, 0.0 }
 0x13f   :  { %827 = vst [vmem:[#allocation7 + $0xf8] sm:$0xff] %v763_v45  ;;  %859 = vst [vmem:[#allocation7 + $0x1f8] sm:$0xff] %v795_v46 }
 0x140   :  { %v761_v41 = vsel %vm665_vm0, %v695_v47, %v521_v39  ;;  %v793_v49 = vsel %vm665_vm0, %v727_v48, %v649_v40 }
 0x141   :  { %825 = vst [vmem:[#allocation7 + $0xe8] sm:$0xff] %v761_v41  ;;  %857 = vst [vmem:[#allocation7 + $0x1e8] sm:$0xff] %v793_v49 }
 0x142   :  { %1153 = shalt.err (!%p1150_p0)
}
 0x143   :  { %s1173_s26 = smov 128   ;;  %s1174_s27 = smov 8  }
 0x144   :  { %871 = dma.vmem_to_hbm [thread:$0]  %s866_s24, 8192, %s1407_s3, [#allocation4], %s1173_s26, %s1173_s26, %s1174_s27  }
 0x145   :  { %1166 = dma.done.wait [#allocation4], 8192  }
 0x146   :  { %1167 = vsyncadd [#allocation4], 4294959104 }
 0x147   :  { %875 = vsyncpa [#allocation3], 1 }
 0x148   :  { %876 = vsyncpa [#allocation6], 1 }
 0x149   :  { %877 = vsyncpa [#allocation4], 1 }

</bundles_post_ra>
